<compile_context>
chip_gen: v5e
topology: v5e:2x2
jax: 0.10.0
libtpu: 0.0.40
codegen_flags: <defaults>
</compile_context>

<pallas_src>
import jax
import jax.numpy as jnp
import numpy as np
from jax import lax
from jax.experimental import pallas as pl
from jax.experimental.pallas import tpu as pltpu


def fused_cnn_kernel(pw_ref, wbd_ref, bcw_ref, wfc_ref, bfc_ref, out_ref):
    # pw_ref : (4*Bt, HW4*K)  bf16   rows ordered g*Bt + b  (g = pool-window position)
    # wbd_ref: (HW4*K, F)     bf16   block-diagonal kron(eye(HW4), Wconv),  F = HW4*16
    # bcw_ref: (1, F)         f32    conv bias tiled over HW4
    # wfc_ref: (F, C)         bf16   FC weight permuted to (hw*16+o, class) order
    # bfc_ref: (1, C)         f32
    # out_ref: (Bt, C)        f32
    bt = out_ref.shape[0]

    # Single MXU matmul for all 4 pool-window positions and all B_tile batch rows.
    y = jnp.dot(pw_ref[...], wbd_ref[...], preferred_element_type=jnp.float32)
    y = y + bcw_ref[...]                                   # (4*Bt, F), lane-dense

    # 2x2 max-pool = max over the 4 row groups [g*bt:(g+1)*bt].
    pooled = jnp.maximum(jnp.maximum(y[0 * bt:1 * bt], y[1 * bt:2 * bt]),
                         jnp.maximum(y[2 * bt:3 * bt], y[3 * bt:4 * bt]))  # (Bt, F)

    # ELU (alpha=1).  ELU is monotone, so ELU(max) == max(ELU): matches conv->ELU->pool order.
    # Clamp the exp argument so the unselected where-branch cannot overflow.
    pooled = jnp.where(pooled > 0, pooled,
                       jnp.exp(jnp.minimum(pooled, 0.0)) - 1.0)

    # Fused FC: pooled is already the flattened activation in (hw*16 + o) order.
    out_ref[...] = (
        jnp.dot(pooled.astype(wfc_ref.dtype), wfc_ref[...],
                preferred_element_type=jnp.float32) + bfc_ref[...]
    )


def simple_cnn_forward(x, params, *, channels, image_size, patch_size, num_classes):
    S = image_size // patch_size
    B = x.shape[0]
    HW4 = (S // 2) * (S // 2)
    K = channels * 9
    F = 16 * HW4

    wc, bc, wfc, bfc = params["wc"], params["bc"], params["wfc"], params["bfc"]

    # 2-way batch split so v7x's two TensorCores both get a grid step (free on v5e/v6e).
    n_tiles = 2 if (B % 2 == 0 and B >= 2) else 1
    Bt = B // n_tiles

    # ---- glue: im2col + pool-window grouping (pure pads/slices/reshapes in XLA) ----
    x = x.reshape(B, channels, S, S)
    x_pad = jnp.pad(x, ((0, 0), (0, 0), (1, 1), (1, 1)))
    taps = [x_pad[:, :, kh:kh + S, kw:kw + S] for kh in range(3) for kw in range(3)]
    patches = jnp.stack(taps, axis=2)                                # (B, C, 9, S, S)
    patches = patches.reshape(B, K, S, S).transpose(0, 2, 3, 1)      # (B, S, S, K)
    patches = patches.reshape(B, S // 2, 2, S // 2, 2, K)            # (b, ih, di, iw, dj, k)
    patches_g = patches.transpose(0, 2, 4, 1, 3, 5).reshape(B, 4, HW4, K)  # g = 2*di + dj

    # Wide layout for the fused kernel: (n_tiles, 4*Bt, HW4*K), rows = g*Bt + b_in_tile.
    pw = patches_g.reshape(n_tiles, Bt, 4, HW4 * K)
    pw = pw.transpose(0, 2, 1, 3).reshape(n_tiles, 4 * Bt, HW4 * K).astype(jnp.bfloat16)

    # Block-diagonal conv weight: Wbd[hw*K + k, hw*16 + o] = wc[o, c, kh, kw] (k = c*9+kh*3+kw).
    wcm = wc.reshape(16, K).T                                        # (K, 16), f32
    wbd = jnp.kron(jnp.eye(HW4, dtype=wcm.dtype), wcm).astype(jnp.bfloat16)   # (HW4*K, F)
    bcw = jnp.tile(bc, HW4).reshape(1, F)                            # f32, index hw*16+o -> bc[o]

    # FC weight permuted so (hw*16 + o) flatten order matches torch's channel-major (o*HW4 + hw).
    wmat = (wfc.reshape(num_classes, 16, HW4).transpose(0, 2, 1)
            .reshape(num_classes, F).T.astype(jnp.bfloat16))         # (F, C)
    bfc2 = bfc.reshape(1, num_classes)                               # f32

    out_t = pl.pallas_call(
        fused_cnn_kernel,
        out_shape=jax.ShapeDtypeStruct((n_tiles, Bt, num_classes), jnp.float32),
        grid=(n_tiles,),
        in_specs=[
            pl.BlockSpec((None, 4 * Bt, HW4 * K), lambda t: (t, 0, 0)),
            pl.BlockSpec((HW4 * K, F), lambda t: (0, 0)),
            pl.BlockSpec((1, F), lambda t: (0, 0)),
            pl.BlockSpec((F, num_classes), lambda t: (0, 0)),
            pl.BlockSpec((1, num_classes), lambda t: (0, 0)),
        ],
        out_specs=pl.BlockSpec((None, Bt, num_classes), lambda t: (t, 0, 0)),
        compiler_params=pltpu.CompilerParams(
            dimension_semantics=("parallel",),
            vmem_limit_bytes=32 * 1024 * 1024,
        ),
    )(pw, wbd, bcw, wmat, bfc2)

    return out_t.reshape(B, num_classes)


def simple_cnn_reference(x, params, *, channels, image_size, patch_size, num_classes):
    # Pure-JAX f32 mirror of the PyTorch forward (NCHW), used only for verification.
    S = image_size // patch_size
    B = x.shape[0]
    x = x.reshape(B, channels, S, S)
    conv = lax.conv_general_dilated(
        x, params["wc"], window_strides=(1, 1), padding=((1, 1), (1, 1)),
        dimension_numbers=("NCHW", "OIHW", "NCHW"))
    conv = conv + params["bc"].reshape(1, 16, 1, 1)
    act = jnp.where(conv > 0, conv, jnp.exp(jnp.minimum(conv, 0.0)) - 1.0)
    pool = act.reshape(B, 16, S // 2, 2, S // 2, 2).max(axis=(3, 5))
    flat = pool.reshape(B, -1)
    return flat @ params["wfc"].T + params["bfc"]


if __name__ == "__main__":
    B, channels, image_size, patch_size, num_classes = 2, 4, 16, 2, 10
    S = image_size // patch_size  # 8

    key = jax.random.PRNGKey(0)
    k1, k2, k3, k4, k5 = jax.random.split(key, 5)
    params = {
        "wc": 0.1 * jax.random.normal(k1, (16, channels, 3, 3), jnp.float32),
        "bc": 0.1 * jax.random.normal(k2, (16,), jnp.float32),
        "wfc": 0.1 * jax.random.normal(
            k3, (num_classes, 16 * (S // 2) * (S // 2)), jnp.float32),
        "bfc": 0.1 * jax.random.normal(k4, (num_classes,), jnp.float32),
    }
    x = jax.random.normal(k5, (B, channels, S, S), jnp.float32)

    out = simple_cnn_forward(
        x, params, channels=channels, image_size=image_size,
        patch_size=patch_size, num_classes=num_classes)
    out = jax.block_until_ready(out)

    ref = simple_cnn_reference(
        x, params, channels=channels, image_size=image_size,
        patch_size=patch_size, num_classes=num_classes)
    # Tolerance loosened vs the pure-f32 version because matmul inputs are bf16 (f32 accumulate);
    # a layout/permutation bug would produce O(0.5) errors, far above this threshold.
    np.testing.assert_allclose(np.asarray(out), np.asarray(ref), rtol=5e-2, atol=5e-2)
    print("KERNEL_OK")
</pallas_src>

<mosaic_0001>
module attributes {stable_mosaic.version = 11 : i64} {
  func.func @fused_cnn_kernel(%arg0: i32, %arg1: memref<1x4x576xbf16, #tpu.memory_space<vmem>>, %arg2: memref<576x256xbf16, #tpu.memory_space<vmem>>, %arg3: memref<1x256xf32, #tpu.memory_space<vmem>>, %arg4: memref<256x10xbf16, #tpu.memory_space<vmem>>, %arg5: memref<1x10xf32, #tpu.memory_space<vmem>>, %arg6: memref<1x1x10xf32, #tpu.memory_space<vmem>>) attributes {dimension_semantics = [#tpu.dimension_semantics<parallel>], iteration_bounds = array<i64: 2>, scalar_prefetch = 0 : i64, scratch_operands = 0 : i64, tpu.core_type = #tpu.core_type<tc>, window_params = [{transform_indices = @transform_0, window_bounds = array<i64: 1, 4, 576>}, {pipeline_mode = #tpu.pipeline_mode<synchronous>, transform_indices = @transform_1, window_bounds = array<i64: 576, 256>}, {pipeline_mode = #tpu.pipeline_mode<synchronous>, transform_indices = @transform_2, window_bounds = array<i64: 1, 256>}, {pipeline_mode = #tpu.pipeline_mode<synchronous>, transform_indices = @transform_3, window_bounds = array<i64: 256, 10>}, {pipeline_mode = #tpu.pipeline_mode<synchronous>, transform_indices = @transform_4, window_bounds = array<i64: 1, 10>}, {transform_indices = @transform_5, window_bounds = array<i64: 1, 1, 10>}]} {
    %c0 = arith.constant 0 : index
    %c0_0 = arith.constant 0 : index
    %c0_1 = arith.constant 0 : index
    %0 = vector.load %arg1[%c0, %c0_0, %c0_1] : memref<1x4x576xbf16, #tpu.memory_space<vmem>>, vector<1x4x576xbf16>
    %1 = vector.shape_cast %0 : vector<1x4x576xbf16> to vector<4x576xbf16>
    %c0_2 = arith.constant 0 : index
    %c0_3 = arith.constant 0 : index
    %2 = vector.load %arg2[%c0_2, %c0_3] : memref<576x256xbf16, #tpu.memory_space<vmem>>, vector<576x256xbf16>
    %cst = arith.constant dense<0.000000e+00> : vector<4x256xf32>
    %3 = tpu.matmul %1, %2, %cst {dimension_numbers = #tpu.dot_dimension_numbers<[1], [0], [0], [1], [0, 0, 1, 1], [], []>} : vector<4x576xbf16>, vector<576x256xbf16>, vector<4x256xf32> -> vector<4x256xf32>
    %c0_4 = arith.constant 0 : index
    %c0_5 = arith.constant 0 : index
    %4 = vector.load %arg3[%c0_4, %c0_5] : memref<1x256xf32, #tpu.memory_space<vmem>>, vector<1x256xf32>
    %5 = vector.broadcast %4 : vector<1x256xf32> to vector<4x256xf32>
    %6 = arith.addf %3, %5 : vector<4x256xf32>
    %7 = vector.extract_strided_slice %6 {offsets = [0, 0], sizes = [1, 256], strides = [1, 1]} : vector<4x256xf32> to vector<1x256xf32>
    %8 = vector.extract_strided_slice %6 {offsets = [1, 0], sizes = [1, 256], strides = [1, 1]} : vector<4x256xf32> to vector<1x256xf32>
    %9 = arith.maximumf %7, %8 : vector<1x256xf32>
    %10 = vector.extract_strided_slice %6 {offsets = [2, 0], sizes = [1, 256], strides = [1, 1]} : vector<4x256xf32> to vector<1x256xf32>
    %11 = vector.extract_strided_slice %6 {offsets = [3, 0], sizes = [1, 256], strides = [1, 1]} : vector<4x256xf32> to vector<1x256xf32>
    %12 = arith.maximumf %10, %11 : vector<1x256xf32>
    %13 = arith.maximumf %9, %12 : vector<1x256xf32>
    %cst_6 = arith.constant 0.000000e+00 : f32
    %14 = vector.broadcast %cst_6 : f32 to vector<1x256xf32>
    %15 = arith.cmpf ogt, %13, %14 : vector<1x256xf32>
    %cst_7 = arith.constant 0.000000e+00 : f32
    %16 = vector.broadcast %cst_7 : f32 to vector<1x256xf32>
    %17 = arith.minimumf %13, %16 : vector<1x256xf32>
    %18 = math.exp %17 : vector<1x256xf32>
    %cst_8 = arith.constant 1.000000e+00 : f32
    %19 = vector.broadcast %cst_8 : f32 to vector<1x256xf32>
    %20 = arith.subf %18, %19 : vector<1x256xf32>
    %21 = arith.select %15, %13, %20 : vector<1x256xi1>, vector<1x256xf32>
    %22 = arith.truncf %21 : vector<1x256xf32> to vector<1x256xbf16>
    %c0_9 = arith.constant 0 : index
    %c0_10 = arith.constant 0 : index
    %23 = vector.load %arg4[%c0_9, %c0_10] : memref<256x10xbf16, #tpu.memory_space<vmem>>, vector<256x10xbf16>
    %cst_11 = arith.constant dense<0.000000e+00> : vector<1x10xf32>
    %24 = tpu.matmul %22, %23, %cst_11 {dimension_numbers = #tpu.dot_dimension_numbers<[1], [0], [0], [1], [0, 0, 1, 1], [], []>} : vector<1x256xbf16>, vector<256x10xbf16>, vector<1x10xf32> -> vector<1x10xf32>
    %c0_12 = arith.constant 0 : index
    %c0_13 = arith.constant 0 : index
    %25 = vector.load %arg5[%c0_12, %c0_13] : memref<1x10xf32, #tpu.memory_space<vmem>>, vector<1x10xf32>
    %26 = arith.addf %24, %25 : vector<1x10xf32>
    %c0_14 = arith.constant 0 : index
    %c0_15 = arith.constant 0 : index
    %c0_16 = arith.constant 0 : index
    %27 = vector.load %arg6[%c0_14, %c0_15, %c0_16] : memref<1x1x10xf32, #tpu.memory_space<vmem>>, vector<1x1x10xf32>
    %28 = vector.shape_cast %27 : vector<1x1x10xf32> to vector<1x10xf32>
    %29 = vector.shape_cast %26 : vector<1x10xf32> to vector<1x1x10xf32>
    tpu.vector_store %arg6[%c0_14, %c0_15, %c0_16], %29 {strides = array<i32>} : memref<1x1x10xf32, #tpu.memory_space<vmem>>, vector<1x1x10xf32>,
    return
  }
  func.func @transform_0(%arg0: i32) -> (i32, i32, i32) {
    %c0_i32 = arith.constant 0 : i32
    %c0_i32_0 = arith.constant 0 : i32
    %c0_i32_1 = arith.constant 0 : i32
    return %arg0, %c0_i32, %c0_i32_0 : i32, i32, i32
  }
  func.func @transform_1(%arg0: i32) -> (i32, i32) {
    %c0_i32 = arith.constant 0 : i32
    %c0_i32_0 = arith.constant 0 : i32
    %c0_i32_1 = arith.constant 0 : i32
    return %c0_i32, %c0_i32_0 : i32, i32
  }
  func.func @transform_2(%arg0: i32) -> (i32, i32) {
    %c0_i32 = arith.constant 0 : i32
    %c0_i32_0 = arith.constant 0 : i32
    %c0_i32_1 = arith.constant 0 : i32
    return %c0_i32, %c0_i32_0 : i32, i32
  }
  func.func @transform_3(%arg0: i32) -> (i32, i32) {
    %c0_i32 = arith.constant 0 : i32
    %c0_i32_0 = arith.constant 0 : i32
    %c0_i32_1 = arith.constant 0 : i32
    return %c0_i32, %c0_i32_0 : i32, i32
  }
  func.func @transform_4(%arg0: i32) -> (i32, i32) {
    %c0_i32 = arith.constant 0 : i32
    %c0_i32_0 = arith.constant 0 : i32
    %c0_i32_1 = arith.constant 0 : i32
    return %c0_i32, %c0_i32_0 : i32, i32
  }
  func.func @transform_5(%arg0: i32) -> (i32, i32, i32) {
    %c0_i32 = arith.constant 0 : i32
    %c0_i32_0 = arith.constant 0 : i32
    %c0_i32_1 = arith.constant 0 : i32
    return %arg0, %c0_i32, %c0_i32_0 : i32, i32, i32
  }
}

</mosaic_0001>

<bundles_post_ra>
// kernel: tpu_custom_call.1
= control target key start
LH: loop header
LB: loop body
LE: loop exit
PB: predicated region body
PF: predicated region fallthrough
CT: control target
= control target key end

     0   :  { %10 = vsyncpa [#allocation3], 0  ;;  %s1913_s0 = inlined_call_operand.vmem [shape: bf16[2,4,576], index: 0, kind: input, shape index: {}]   ;;  %s1914_s1 = inlined_call_operand.hbm [shape: bf16[576,256], index: 1, kind: input, shape index: {}]   ;;  %s1915_s2 = inlined_call_operand.vmem [shape: f32[1,256], index: 2, kind: input, shape index: {}]   ;;  %s1916_s3 = inlined_call_operand.vmem [shape: bf16[256,10], index: 3, kind: input, shape index: {}]   ;;  %s1917_s4 = inlined_call_operand.vmem [shape: f32[1,10], index: 4, kind: input, shape index: {}]   ;;  %s1918_s5 = inlined_call_operand.hbm [shape: f32[2,1,10], index: 5, kind: output, shape index: {}]  }
   0x1   :  { %11 = vsyncpa [#allocation4], 0 }
   0x2   :  { %13 = vsyncpa [#allocation4 + $0x1], 0  ;;  %s1735_s18 = smov 0   ;;  %s1737_s19 = smov 0  }
   0x3   :  { %s1739_s20 = smov 0   ;;  %s1741_s21 = smov 0  }
   0x4 LB: > { %s1756_s22 = sadd.s32 4294967295, %s1700_s21   ;;  %s1094_s23 = sadd.s32 4294967294, %s1700_s21   ;;  %s1700_s21 = sphi %s1741_s21, %s1924_s21   ;;  %s1696_s20 = sphi %s1739_s20, %s1923_s20   ;;  %s1692_s19 = sphi %s1737_s19, %s1922_s19   ;;  %s1688_s18 = sphi %s1735_s18, %s1921_s18  }
   0x5   : > { %s1760_s24 = sadd.s32 1, %s1700_s21   ;;  %s136_s25 = sadd.s32 1, %s1696_s20 }
   0x6   : > { %s133_s26 = ssub.s32 %s1700_s21, %s1760_s24  ;;  %p146_p0 = scmp.ne.s32.totalorder %s1696_s20, %s1692_s19 }
   0x7   : > { %p134_p1 = scmp.eq.s32.totalorder %s133_s26, 0  ;;  %p147_p2 = scmp.eq.s32.totalorder %s1756_s22, 1 }
   0x8   : > { %p152_p3 = scmp.ne.s32.totalorder %s1692_s19, %s1688_s18  ;;  %p153_p4 = scmp.eq.s32.totalorder %s1094_s23, 1 }
   0x9   : > { %s1771_s27 = scalar_select %p134_p1, %s1696_s20, %s136_s25  }
   0xa   : > { %p1773_p5 = por %p147_p2, %p146_p0  ;;  %p1777_p6 = por %p153_p4, %p152_p3 }
   0xb   : > { %p1095_p7 = scmp.ge.s32.totalorder %s1700_s21, 1  ;;  %p160_p8 = scmp.lt.s32.totalorder %s1700_s21, 3 }
   0xc   : > { %p1562_p9 = scmp.eq.s32.totalorder %s1756_s22, 0  ;;  %s171_s7 = sshll.u32 %s1914_s1, 4  ;;  %s172_s7 = int_to_ptr.hbm [resolvable:$true] %s171_s7 }
   0xd   : > { %p161_p10 = pnand %p1095_p7, %p160_p8  ;;  %s1702_s8 = smov [#allocation2]  }
   0xe   : > { %s173_s9 = sshll.u32 %s1702_s8, 4  ;;  %s1703_s10 = smov 128   ;;  %s174_s9 = int_to_ptr.vmem [resolvable:$true] %s173_s9 }
   0xf   : > { %p1554_p11 = pneg %p161_p10  ;;  %s1704_s11 = smov 8  }
  0x10   : > { %206 = sbr.rel (%p161_p10) target bundleno = 399 (0x18f), region = 40 }
  0x11   : > { %p1555_p12 = pnand %p1562_p9, %p1554_p11 }
  0x13   : > { %1557 = dma.hbm_to_vmem [thread:$0]  (!%p1555_p12), %s172_s7, 9216, %s174_s9, [#allocation3], %s1703_s10, %s1703_s10, %s1704_s11  }
  0x15   : > { %1679 = dma.done.wait (%p1562_p9), [#allocation3], 9216  }
  0x16   : > { %1681 = vsyncadd (%p1562_p9), [#allocation3], 4294958080  ;;  %p234_p13 = scmp.lt.s32.totalorder %s1756_s22, 1  ;;  %v1159_v0 = vld [vmem:[#allocation2 + $0x70] sm:$0xf]  ;;  %vm694_vm0 = vcmask 523264   ;;  %s1023_s6 = scalar_lea.hbm %s1918_s5, %s1756_s22 }
  0x17   : > { %v1474_v1 = vld [vmem:[#allocation2 + $0x74] sm:$0xf0]  ;;  %v1223_v2 = vld [vmem:[#allocation2 + $0xf0] sm:$0xf]  ;;  %v1151_v11 = vld [vmem:[#allocation2 + $0x60] sm:$0xf] }
  0x18   : > { %v1160_v3 = vor.u32 %v1474_v1, %v1159_v0  ;;  %v1490_v4 = vld [vmem:[#allocation2 + $0xf4] sm:$0xf0]  ;;  %v1287_v5 = vld [vmem:[#allocation2 + $0x170] sm:$0xf]  ;;  %v1472_v13 = vld [vmem:[#allocation2 + $0x64] sm:$0xf0] }
  0x19   : > { %v1506_v6 = vld [vmem:[#allocation2 + $0x174] sm:$0xf0]  ;;  %v1224_v7 = vor.u32 %v1490_v4, %v1223_v2  ;;  %v1351_v9 = vld [vmem:[#allocation2 + $0x1f0] sm:$0xf]  ;;  %v1215_v14 = vld [vmem:[#allocation2 + $0xe0] sm:$0xf]  ;;  %v1152_v16 = vor.u32 %v1472_v13, %v1151_v11 }
  0x1a   : > { %v1288_v8 = vor.u32 %v1506_v6, %v1287_v5  ;;  %v1522_v10 = vld [vmem:[#allocation2 + $0x1f4] sm:$0xf0]  ;;  %697 = vmatpush.bf16.msra.mxu0 %v1160_v3  ;;  %v1488_v15 = vld [vmem:[#allocation2 + $0xe4] sm:$0xf0]  ;;  %v1279_v18 = vld [vmem:[#allocation2 + $0x160] sm:$0xf] }
  0x1b   : > { %v1352_v12 = vor.u32 %v1522_v10, %v1351_v9  ;;  %710 = vmatpush.bf16.msra.mxu1 %v1224_v7  ;;  %v1216_v17 = vor.u32 %v1488_v15, %v1215_v14  ;;  %v1504_v19 = vld [vmem:[#allocation2 + $0x164] sm:$0xf0]  ;;  %v1343_v20 = vld [vmem:[#allocation2 + $0x1e0] sm:$0xf]  ;;  %v1143_v23 = vld [vmem:[#allocation2 + $0x50] sm:$0xf] }
  0x1c   : > { %723 = vmatpush.bf16.msra.mxu2 %v1288_v8  ;;  %v1280_v21 = vor.u32 %v1504_v19, %v1279_v18  ;;  %v1520_v22 = vld [vmem:[#allocation2 + $0x1e4] sm:$0xf0]  ;;  %v1470_v24 = vld [vmem:[#allocation2 + $0x54] sm:$0xf0]  ;;  %v1207_v26 = vld [vmem:[#allocation2 + $0xd0] sm:$0xf] }
  0x1d   : > { %736 = vmatpush.bf16.msra.mxu3 %v1352_v12  ;;  %v1344_v25 = vor.u32 %v1520_v22, %v1343_v20  ;;  %v1486_v27 = vld [vmem:[#allocation2 + $0xd4] sm:$0xf0]  ;;  %v1271_v28 = vld [vmem:[#allocation2 + $0x150] sm:$0xf]  ;;  %v1144_v29 = vor.u32 %v1470_v24, %v1143_v23  ;;  %v1135_v35 = vld [vmem:[#allocation2 + $0x40] sm:$0xf] }
  0x1e   : > { %698 = vmatpush.bf16.msra.mxu0 %v1152_v16  ;;  %v1502_v30 = vld [vmem:[#allocation2 + $0x154] sm:$0xf0]  ;;  %v1335_v31 = vld [vmem:[#allocation2 + $0x1d0] sm:$0xf]  ;;  %v1208_v33 = vor.u32 %v1486_v27, %v1207_v26  ;;  %v1468_v36 = vld [vmem:[#allocation2 + $0x44] sm:$0xf0] }
  0x1f   : > { %v1518_v32 = vld [vmem:[#allocation2 + $0x1d4] sm:$0xf0]  ;;  %711 = vmatpush.bf16.msra.mxu1 %v1216_v17  ;;  %v1272_v34 = vor.u32 %v1502_v30, %v1271_v28  ;;  %v1199_v37 = vld [vmem:[#allocation2 + $0xc0] sm:$0xf]  ;;  %v1484_v39 = vld [vmem:[#allocation2 + $0xc4] sm:$0xf0]  ;;  %v1136_v44 = vor.u32 %v1468_v36, %v1135_v35 }
  0x20   : > { %724 = vmatpush.bf16.msra.mxu2 %v1280_v21  ;;  %v1336_v38 = vor.u32 %v1518_v32, %v1335_v31  ;;  %v1263_v40 = vld [vmem:[#allocation2 + $0x140] sm:$0xf]  ;;  %v1500_v41 = vld [vmem:[#allocation2 + $0x144] sm:$0xf0]  ;;  %s1797_s12 = scalar_select %p234_p13, %s1756_s22, 1  ;;  %v1200_v45 = vor.u32 %v1484_v39, %v1199_v37  ;;  %vm1012_vm3 = vcmask 73728  }
  0x21   : > { %737 = vmatpush.bf16.msra.mxu3 %v1344_v25  ;;  %v1327_v42 = vld [vmem:[#allocation2 + $0x1c0] sm:$0xf]  ;;  %v1516_v43 = vld [vmem:[#allocation2 + $0x1c4] sm:$0xf0]  ;;  %v1264_v46 = vor.u32 %v1500_v41, %v1263_v40  ;;  %v1127_v47 = vld [vmem:[#allocation2 + $0x30] sm:$0xf] }
  0x22   : > { %699 = vmatpush.bf16.msra.mxu0 %v1144_v29  ;;  %v1466_v48 = vld [vmem:[#allocation2 + $0x34] sm:$0xf0]  ;;  %v1191_v49 = vld [vmem:[#allocation2 + $0xb0] sm:$0xf]  ;;  %v1328_v50 = vor.u32 %v1516_v43, %v1327_v42  ;;  %s1547_s13 = smul.u32 10, %s1797_s12  ;;  %s232_s25 = sand.u32 1, %s1692_s19  }
  0x23   : > { %712 = vmatpush.bf16.msra.mxu1 %v1208_v33  ;;  %v1482_v51 = vld [vmem:[#allocation2 + $0xb4] sm:$0xf0]  ;;  %v1255_v52 = vld [vmem:[#allocation2 + $0x130] sm:$0xf]  ;;  %v1128_v56 = vor.u32 %v1466_v48, %v1127_v47  ;;  %v1119_v59 = vld [vmem:[#allocation2 + $0x20] sm:$0xf] }
  0x24   : > { %725 = vmatpush.bf16.msra.mxu2 %v1272_v34  ;;  %v1498_v53 = vld [vmem:[#allocation2 + $0x134] sm:$0xf0]  ;;  %v1319_v54 = vld [vmem:[#allocation2 + $0x1b0] sm:$0xf]  ;;  %v1192_v57 = vor.u32 %v1482_v51, %v1191_v49  ;;  %v1464_v60 = vld [vmem:[#allocation2 + $0x24] sm:$0xf0]  ;;  %s238_s16 = scalar_lea.vmem %s1913_s0, %s1547_s13 }
  0x25   : > { %738 = vmatpush.bf16.msra.mxu3 %v1336_v38  ;;  %v1514_v55 = vld [vmem:[#allocation2 + $0x1b4] sm:$0xf0]  ;;  %v1256_v58 = vor.u32 %v1498_v53, %v1255_v52  ;;  %v1183_v61 = vld [vmem:[#allocation2 + $0xa0] sm:$0xf]  ;;  %v1480_v63 = vld [vmem:[#allocation2 + $0xa4] sm:$0xf0]  ;;  %v1120_v4 = vor.u32 %v1464_v60, %v1119_v59 }
  0x26   : > { %700 = vmatpush.bf16.msra.mxu0 %v1136_v44  ;;  %v1320_v62 = vor.u32 %v1514_v55, %v1319_v54  ;;  %v1247_v0 = vld [vmem:[#allocation2 + $0x120] sm:$0xf]  ;;  %v1496_v1 = vld [vmem:[#allocation2 + $0x124] sm:$0xf0]  ;;  %v1111_v5 = vld [vmem:[#allocation2 + $0x10] sm:$0xf]  ;;  %v1184_v6 = vor.u32 %v1480_v63, %v1183_v61 }
  0x27   : > { %713 = vmatpush.bf16.msra.mxu1 %v1200_v45  ;;  %v1311_v2 = vld [vmem:[#allocation2 + $0x1a0] sm:$0xf]  ;;  %v1512_v3 = vld [vmem:[#allocation2 + $0x1a4] sm:$0xf0]  ;;  %v1248_v7 = vor.u32 %v1496_v1, %v1247_v0  ;;  %v1462_v8 = vld [vmem:[#allocation2 + $0x14] sm:$0xf0] }
  0x28   : > { %726 = vmatpush.bf16.msra.mxu2 %v1264_v46  ;;  %v1175_v9 = vld [vmem:[#allocation2 + $0x90] sm:$0xf]  ;;  %v1478_v10 = vld [vmem:[#allocation2 + $0x94] sm:$0xf0]  ;;  %v1312_v11 = vor.u32 %v1512_v3, %v1311_v2  ;;  %v1103_v16 = vld [vmem:[#allocation2] sm:$0xf]  ;;  %v1112_v18 = vor.u32 %v1462_v8, %v1111_v5 }
  0x29   : > { %739 = vmatpush.bf16.msra.mxu3 %v1328_v50  ;;  %v1239_v12 = vld [vmem:[#allocation2 + $0x110] sm:$0xf]  ;;  %v1494_v13 = vld [vmem:[#allocation2 + $0x114] sm:$0xf0]  ;;  %v1460_v17 = vld [vmem:[#allocation2 + $0x4] sm:$0xf0]  ;;  %v1176_v23 = vor.u32 %v1478_v10, %v1175_v9 }
  0x2a   : > { %701 = vmatpush.bf16.msra.mxu0 %v1128_v56  ;;  %v1303_v14 = vld [vmem:[#allocation2 + $0x190] sm:$0xf]  ;;  %v1510_v15 = vld [vmem:[#allocation2 + $0x194] sm:$0xf0]  ;;  %v1167_v19 = vld [vmem:[#allocation2 + $0x80] sm:$0xf]  ;;  %v1240_v24 = vor.u32 %v1494_v13, %v1239_v12  ;;  %v1104_v33 = vor.u32 %v1460_v17, %v1103_v16 }
  0x2b   : > { %714 = vmatpush.bf16.msra.mxu1 %v1192_v57  ;;  %v1476_v20 = vld [vmem:[#allocation2 + $0x84] sm:$0xf0]  ;;  %v1231_v21 = vld [vmem:[#allocation2 + $0x100] sm:$0xf]  ;;  %v240_v26 = vld [vmem:[%s238_s16] sm:$0xff]  ;;  %v1304_v28 = vor.u32 %v1510_v15, %v1303_v14  ;;  %s233_s9 = scalar_lea.vmem [#allocation5], %s232_s25 }
  0x2c   : > { %727 = vmatpush.bf16.msra.mxu2 %v1256_v58  ;;  %v1492_v22 = vld [vmem:[#allocation2 + $0x104] sm:$0xf0]  ;;  %v1295_v25 = vld [vmem:[#allocation2 + $0x180] sm:$0xf]  ;;  %v1383_v30 = vld [vmem:[#allocation2 + $0x230] sm:$0xf]  ;;  %v1168_v37 = vor.u32 %v1476_v20, %v1167_v19 }
  0x2d   : > { %740 = vmatpush.bf16.msra.mxu3 %v1320_v62  ;;  %v241_v27 = vld [vmem:[%s238_s16 + $0x8] sm:$0x3]  ;;  %v1508_v29 = vld [vmem:[#allocation2 + $0x184] sm:$0xf0]  ;;  %321 = vst [vmem:[#allocation1] ss:$4 sm:$0xff] %v240_v26  ;;  %v1232_v38 = vor.u32 %v1492_v22, %v1231_v21 }
  0x2e   : > { %702 = vmatpush.bf16.msra.mxu0 %v1120_v4  ;;  %v1530_v31 = vld [vmem:[#allocation2 + $0x234] sm:$0xf0]  ;;  %v1473_v32 = vld [vmem:[#allocation2 + $0x74] sm:$0xf]  ;;  %324 = vst [vmem:[#allocation1 + $0x20] ss:$4 sm:$0xff] %v241_v27  ;;  %v1296_v41 = vor.u32 %v1508_v29, %v1295_v25 }
  0x2f   : > { %715 = vmatpush.bf16.msra.mxu1 %v1184_v6  ;;  %v1161_v34 = vld [vmem:[#allocation2 + $0x78] sm:$0xf0]  ;;  %v1489_v35 = vld [vmem:[#allocation2 + $0xf4] sm:$0xf]  ;;  %v1384_v42 = vor.u32 %v1530_v31, %v1383_v30  ;;  %v1375_v43 = vld [vmem:[#allocation2 + $0x220] sm:$0xf] }
  0x30   : > { %728 = vmatpush.bf16.msra.mxu2 %v1248_v7  ;;  %v1225_v36 = vld [vmem:[#allocation2 + $0xf8] sm:$0xf0]  ;;  %v1505_v39 = vld [vmem:[#allocation2 + $0x174] sm:$0xf]  ;;  %v1528_v44 = vld [vmem:[#allocation2 + $0x224] sm:$0xf0]  ;;  %v1164_v45 = vor.u32 %v1473_v32, %v1161_v34 }
  0x31   : > { %741 = vmatpush.bf16.msra.mxu3 %v1312_v11  ;;  %v1289_v40 = vld [vmem:[#allocation2 + $0x178] sm:$0xf0]  ;;  %v1228_v46 = vor.u32 %v1489_v35, %v1225_v36  ;;  %v1471_v47 = vld [vmem:[#allocation2 + $0x64] sm:$0xf]  ;;  %v1153_v48 = vld [vmem:[#allocation2 + $0x68] sm:$0xf0]  ;;  %v1376_v57 = vor.u32 %v1528_v44, %v1375_v43 }
  0x32   : > { %703 = vmatpush.bf16.msra.mxu0 %v1112_v18  ;;  %v1487_v49 = vld [vmem:[#allocation2 + $0xe4] sm:$0xf]  ;;  %v1292_v50 = vor.u32 %v1505_v39, %v1289_v40  ;;  %v1217_v51 = vld [vmem:[#allocation2 + $0xe8] sm:$0xf0]  ;;  %v1367_v55 = vld [vmem:[#allocation2 + $0x210] sm:$0xf]  ;;  %v1156_v60 = vor.u32 %v1471_v47, %v1153_v48 }
  0x33   : > { %716 = vmatpush.bf16.msra.mxu1 %v1176_v23  ;;  %v1503_v52 = vld [vmem:[#allocation2 + $0x164] sm:$0xf]  ;;  %v1281_v53 = vld [vmem:[#allocation2 + $0x168] sm:$0xf0]  ;;  %v1526_v56 = vld [vmem:[#allocation2 + $0x214] sm:$0xf0]  ;;  %v1220_v61 = vor.u32 %v1487_v49, %v1217_v51 }
  0x34   : > { %729 = vmatpush.bf16.msra.mxu2 %v1240_v24  ;;  %v1805_v54 = vld.sshfl [vmem:[#allocation1] sm:$0xff pattern:$0x73625140]  ;;  %v1807_v58 = vld.sshfl [vmem:[#allocation1 + $0x8] sm:$0xff pattern:$0x73625140]  ;;  %v1284_v0 = vor.u32 %v1503_v52, %v1281_v53  ;;  %v1368_v6 = vor.u32 %v1526_v56, %v1367_v55 }
  0x35   : > { %742 = vmatpush.bf16.msra.mxu3 %v1304_v28  ;;  %v1809_v59 = vld.sshfl [vmem:[#allocation1 + $0x10] sm:$0xff pattern:$0x73625140]  ;;  %v1469_v62 = vld [vmem:[#allocation2 + $0x54] sm:$0xf]  ;;  %s1025_s10 = sshll.u32 %s233_s9, 4  ;;  %s1026_s10 = int_to_ptr.vmem [resolvable:$true] %s1025_s10 }
  0x36   : > { %704 = vmatpush.bf16.msra.mxu0 %v1104_v33  ;;  %v1811_v63 = vld.sshfl [vmem:[#allocation1 + $0x18] sm:$0xff pattern:$0x73625140]  ;;  %v1145_v1 = vld [vmem:[#allocation2 + $0x58] sm:$0xf0]  ;;  %s1027_s11 = sshll.u32 %s1023_s6, 4  ;;  %s1028_s11 = int_to_ptr.hbm [resolvable:$true] %s1027_s11 }
  0x37   : > { %717 = vmatpush.bf16.msra.mxu1 %v1168_v37  ;;  %v1485_v2 = vld [vmem:[#allocation2 + $0xd4] sm:$0xf]  ;;  %v1209_v3 = vld [vmem:[#allocation2 + $0xd8] sm:$0xf0]  ;;  %v1359_v7 = vld [vmem:[#allocation2 + $0x200] sm:$0xf]  ;;  %v1148_v8 = vor.u32 %v1469_v62, %v1145_v1 }
  0x38   : > { %730 = vmatpush.bf16.msra.mxu2 %v1232_v38  ;;  %v1501_v4 = vld [vmem:[#allocation2 + $0x154] sm:$0xf]  ;;  %v1273_v5 = vld [vmem:[#allocation2 + $0x158] sm:$0xf0]  ;;  %v1212_v9 = vor.u32 %v1485_v2, %v1209_v3  ;;  %v1524_v10 = vld [vmem:[#allocation2 + $0x204] sm:$0xf0] }
  0x39   : > { %743 = vmatpush.bf16.msra.mxu3 %v1296_v41  ;;  %705 = vmatmul.bf16.vlgmr.msra.gmra.mxu0 %v1805_v54  ;;  %v1467_v11 = vld [vmem:[#allocation2 + $0x44] sm:$0xf]  ;;  %v1137_v12 = vld [vmem:[#allocation2 + $0x48] sm:$0xf0]  ;;  %v1276_v13 = vor.u32 %v1501_v4, %v1273_v5  ;;  %v1521_v18 = vld [vmem:[#allocation2 + $0x1f4] sm:$0xf]  ;;  %v1360_v20 = vor.u32 %v1524_v10, %v1359_v7 }
  0x3a   : > { %753 = vmatpush.bf16.msrb.mxu0 %v1384_v42  ;;  %718 = vmatmul.bf16.vlgmr.msra.gmra.mxu1 %v1807_v58  ;;  %v1483_v14 = vld [vmem:[#allocation2 + $0xc4] sm:$0xf]  ;;  %v1201_v15 = vld [vmem:[#allocation2 + $0xc8] sm:$0xf0]  ;;  %v1353_v19 = vld [vmem:[#allocation2 + $0x1f8] sm:$0xf0]  ;;  %v1140_v21 = vor.u32 %v1467_v11, %v1137_v12 }
  0x3b   : > { %762 = vmatpush.bf16.msrb.mxu1 %v1164_v45  ;;  %731 = vmatmul.bf16.vlgmr.msra.gmra.mxu2 %v1809_v59  ;;  %v1499_v16 = vld [vmem:[#allocation2 + $0x144] sm:$0xf]  ;;  %v1265_v17 = vld [vmem:[#allocation2 + $0x148] sm:$0xf0]  ;;  %v1204_v22 = vor.u32 %v1483_v14, %v1201_v15  ;;  %v1465_v23 = vld [vmem:[#allocation2 + $0x34] sm:$0xf]  ;;  %v1356_v26 = vor.u32 %v1521_v18, %v1353_v19 }
  0x3c   : > { %775 = vmatpush.bf16.msrb.mxu2 %v1228_v46  ;;  %744 = vmatmul.bf16.vlgmr.msra.gmra.mxu3 %v1811_v63  ;;  %v1129_v24 = vld [vmem:[#allocation2 + $0x38] sm:$0xf0]  ;;  %v1268_v25 = vor.u32 %v1499_v16, %v1265_v17  ;;  %v1481_v27 = vld [vmem:[#allocation2 + $0xb4] sm:$0xf]  ;;  %v1519_v31 = vld [vmem:[#allocation2 + $0x1e4] sm:$0xf] }
  0x3d   : > { %788 = vmatpush.bf16.msrb.mxu3 %v1292_v50  ;;  %v1193_v28 = vld [vmem:[#allocation2 + $0xb8] sm:$0xf0]  ;;  %v1497_v29 = vld [vmem:[#allocation2 + $0x134] sm:$0xf]  ;;  %v1345_v32 = vld [vmem:[#allocation2 + $0x1e8] sm:$0xf0]  ;;  %v1132_v33 = vor.u32 %v1465_v23, %v1129_v24 }
  0x3e   : > { %754 = vmatpush.bf16.msrb.mxu0 %v1376_v57  ;;  %v1257_v30 = vld [vmem:[#allocation2 + $0x138] sm:$0xf0]  ;;  %v1196_v34 = vor.u32 %v1481_v27, %v1193_v28  ;;  %v1463_v35 = vld [vmem:[#allocation2 + $0x24] sm:$0xf]  ;;  %v1121_v36 = vld [vmem:[#allocation2 + $0x28] sm:$0xf0]  ;;  %v1348_v38 = vor.u32 %v1519_v31, %v1345_v32 }
  0x3f   : > { %763 = vmatpush.bf16.msrb.mxu1 %v1156_v60  ;;  %v1260_v37 = vor.u32 %v1497_v29, %v1257_v30  ;;  %v1479_v39 = vld [vmem:[#allocation2 + $0xa4] sm:$0xf]  ;;  %v1185_v40 = vld [vmem:[#allocation2 + $0xa8] sm:$0xf0]  ;;  %v1517_v43 = vld [vmem:[#allocation2 + $0x1d4] sm:$0xf]  ;;  %v1124_v46 = vor.u32 %v1463_v35, %v1121_v36 }
  0x40   : > { %776 = vmatpush.bf16.msrb.mxu2 %v1220_v61  ;;  %v1495_v41 = vld [vmem:[#allocation2 + $0x124] sm:$0xf]  ;;  %v1249_v42 = vld [vmem:[#allocation2 + $0x128] sm:$0xf0]  ;;  %v1337_v44 = vld [vmem:[#allocation2 + $0x1d8] sm:$0xf0]  ;;  %v1188_v47 = vor.u32 %v1479_v39, %v1185_v40 }
  0x41   : > { %789 = vmatpush.bf16.msrb.mxu3 %v1284_v0  ;;  %v1817_v45 = vld.sshfl [vmem:[#allocation1 + $0x20] sm:$0xff pattern:$0x73625140]  ;;  %v1461_v48 = vld [vmem:[#allocation2 + $0x14] sm:$0xf]  ;;  %v1252_v50 = vor.u32 %v1495_v41, %v1249_v42  ;;  %v1340_v51 = vor.u32 %v1517_v43, %v1337_v44  ;;  %v1533_v39 = vld [vmem:[%s1916_s3 + $0x10] sm:$0xff] }
  0x42   : > { %755 = vmatpush.bf16.msrb.mxu0 %v1368_v6  ;;  %v1113_v49 = vld [vmem:[#allocation2 + $0x18] sm:$0xf0]  ;;  %v1477_v52 = vld [vmem:[#allocation2 + $0x94] sm:$0xf]  ;;  %v1515_v57 = vld [vmem:[#allocation2 + $0x1c4] sm:$0xf] }
  0x43   : > { %764 = vmatpush.bf16.msrb.mxu1 %v1148_v8  ;;  %v1177_v53 = vld [vmem:[#allocation2 + $0x98] sm:$0xf0]  ;;  %v1493_v55 = vld [vmem:[#allocation2 + $0x114] sm:$0xf]  ;;  %v1329_v60 = vld [vmem:[#allocation2 + $0x1c8] sm:$0xf0]  ;;  %v1116_v61 = vor.u32 %v1461_v48, %v1113_v49 }
  0x44   : > { %777 = vmatpush.bf16.msrb.mxu2 %v1212_v9  ;;  %v1241_v56 = vld [vmem:[#allocation2 + $0x118] sm:$0xf0]  ;;  %v1180_v62 = vor.u32 %v1477_v52, %v1177_v53  ;;  %v1459_v0 = vld [vmem:[#allocation2 + $0x4] sm:$0xf]  ;;  %v1105_v1 = vld [vmem:[#allocation2 + $0x8] sm:$0xf0]  ;;  %v1332_v3 = vor.u32 %v1515_v57, %v1329_v60 }
  0x45   : > { %790 = vmatpush.bf16.msrb.mxu3 %v1276_v13  ;;  %v1244_v2 = vor.u32 %v1493_v55, %v1241_v56  ;;  %v1475_v4 = vld [vmem:[#allocation2 + $0x84] sm:$0xf]  ;;  %v1169_v5 = vld [vmem:[#allocation2 + $0x88] sm:$0xf0]  ;;  %v1513_v8 = vld [vmem:[#allocation2 + $0x1b4] sm:$0xf]  ;;  %v1108_v12 = vor.u32 %v1459_v0, %v1105_v1 }
  0x46   : > { %756 = vmatpush.bf16.msrb.mxu0 %v1360_v20  ;;  %v1491_v6 = vld [vmem:[#allocation2 + $0x104] sm:$0xf]  ;;  %v1233_v7 = vld [vmem:[#allocation2 + $0x108] sm:$0xf0]  ;;  %v1321_v9 = vld [vmem:[#allocation2 + $0x1b8] sm:$0xf0]  ;;  %v1172_v13 = vor.u32 %v1475_v4, %v1169_v5 }
  0x47   : > { %765 = vmatpush.bf16.msrb.mxu1 %v1140_v21  ;;  %v1529_v10 = vld [vmem:[#allocation2 + $0x234] sm:$0xf]  ;;  %v1385_v11 = vld [vmem:[#allocation2 + $0x238] sm:$0xf0]  ;;  %v1236_v14 = vor.u32 %v1491_v6, %v1233_v7  ;;  %v1324_v15 = vor.u32 %v1513_v8, %v1321_v9  ;;  %v1511_v17 = vld [vmem:[#allocation2 + $0x1a4] sm:$0xf] }
  0x48   : > { %778 = vmatpush.bf16.msrb.mxu2 %v1204_v22  ;;  %v1388_v16 = vor.u32 %v1529_v10, %v1385_v11  ;;  %v1313_v18 = vld [vmem:[#allocation2 + $0x1a8] sm:$0xf0]  ;;  %v1527_v19 = vld [vmem:[#allocation2 + $0x224] sm:$0xf]  ;;  %v1509_v23 = vld [vmem:[#allocation2 + $0x194] sm:$0xf] }
  0x49   : > { %791 = vmatpush.bf16.msrb.mxu3 %v1268_v25  ;;  %1389 = vmatmul.msk.bf16.vlgmr.msrb.gmra.mxu0 %vm694_vm0, %v1817_v45  ;;  %v1377_v20 = vld [vmem:[#allocation2 + $0x228] sm:$0xf0]  ;;  %v1316_v21 = vor.u32 %v1511_v17, %v1313_v18  ;;  %v1305_v24 = vld [vmem:[#allocation2 + $0x198] sm:$0xf0]  ;;  %v1525_v25 = vld [vmem:[#allocation2 + $0x214] sm:$0xf] }
  0x4a   : > { %801 = vmatpush.bf16.msra.mxu0 %v1356_v26  ;;  %v1380_v22 = vor.u32 %v1527_v19, %v1377_v20  ;;  %v1369_v26 = vld [vmem:[#allocation2 + $0x218] sm:$0xf0]  ;;  %v1308_v27 = vor.u32 %v1509_v23, %v1305_v24  ;;  %v1507_v29 = vld [vmem:[#allocation2 + $0x184] sm:$0xf]  ;;  %v1297_v30 = vld [vmem:[#allocation2 + $0x188] sm:$0xf0] }
  0x4b   : > { %766 = vmatpush.bf16.msrb.mxu1 %v1132_v33  ;;  %v1372_v28 = vor.u32 %v1525_v25, %v1369_v26  ;;  %v1523_v31 = vld [vmem:[#allocation2 + $0x204] sm:$0xf]  ;;  %v1361_v32 = vld [vmem:[#allocation2 + $0x208] sm:$0xf0]  ;;  %v1300_v33 = vor.u32 %v1507_v29, %v1297_v30  ;;  %v314_v35 = vld [vmem:[%s1915_s2] sm:$0x3] }
  0x4c   : > { %779 = vmatpush.bf16.msrb.mxu2 %v1196_v34  ;;  %v1364_v34 = vor.u32 %v1523_v31, %v1361_v32  ;;  %v1534_v36 = vld [vmem:[%s1916_s3 + $0x18] sm:$0xff]  ;;  %v1532_v42 = vld [vmem:[%s1916_s3 + $0x8] sm:$0xff]  ;;  %v1541_v6 = vld [vmem:[%s1916_s3 + $0x50] sm:$0xff]  ;;  %v317_v9 = vperm.slane %v314_v35, 1  ;;  %s1015_s12 = scalar_lea.sflag [#allocation4], %s232_s25  ;;  %s1648_s13 = sshra.s32 %s1028_s11, 4  ;;  %s1649_s13 = int_to_ptr.hbm [resolvable:$true] %s1648_s13 }
  0x4d   : > { %792 = vmatpush.bf16.msrb.mxu3 %v1260_v37  ;;  %v316_v37 = vperm.slane %v314_v35, 0  ;;  %v1544_v57 = vld [vmem:[%s1916_s3 + $0x68] sm:$0xff]  ;;  %s1650_s14 = scalar_lea.hbm %s1649_s13, 1  ;;  %s1654_s16 = scalar_lea.hbm %s1918_s5, 2 }
  0x4e   : > { %802 = vmatpush.bf16.msra.mxu0 %v1348_v38  ;;  %v1540_v10 = vld [vmem:[%s1916_s3 + $0x48] sm:$0xff]  ;;  %p1651_p0 = scmp.ne.s32.totalorder %s1649_s13, %s1650_s14  ;;  %p1655_p3 = scmp.lt.s32.totalorder %s1649_s13, %s1918_s5 }
  0x4f   : > { %767 = vmatpush.bf16.msrb.mxu1 %v1124_v46  ;;  %v1546_v46 = vld [vmem:[%s1916_s3 + $0x78] sm:$0xff]  ;;  %p1656_p4 = scmp.lt.s32.totalorder %s1654_s16, %s1650_s14 }
  0x50   : > { %780 = vmatpush.bf16.msrb.mxu2 %v1188_v47  ;;  %p1652_p1 = pnand %p1651_p0, %p1773_p5 }
  0x51   : > { %793 = vmatpush.bf16.msrb.mxu3 %v1252_v50  ;;  %p1657_p7 = por %p1656_p4, %p1655_p3 }
  0x52   : > { %803 = vmatpush.bf16.msra.mxu0 %v1340_v51  ;;  %v1545_v51 = vld [vmem:[%s1916_s3 + $0x70] sm:$0xff]  ;;  %p1653_p2 = pneg %p1652_p1 }
  0x53   : > { %768 = vmatpush.bf16.msrb.mxu1 %v1116_v61 }
  0x54   : > { %781 = vmatpush.bf16.msrb.mxu2 %v1180_v62  ;;  %v1543_v62 = vld [vmem:[%s1916_s3 + $0x60] sm:$0xff]  ;;  %p1658_p8 = pnand %p1657_p7, %p1653_p2 }
  0x55   : > { %794 = vmatpush.bf16.msrb.mxu3 %v1244_v2 }
  0x56   : > { %804 = vmatpush.bf16.msra.mxu0 %v1332_v3  ;;  %v1542_v3 = vld [vmem:[%s1916_s3 + $0x58] sm:$0xff] }
  0x57   : > { %769 = vmatpush.bf16.msrb.mxu1 %v1108_v12 }
  0x58   : > { %782 = vmatpush.bf16.msrb.mxu2 %v1172_v13  ;;  %v1539_v13 = vld [vmem:[%s1916_s3 + $0x40] sm:$0xff] }
  0x59   : > { %795 = vmatpush.bf16.msrb.mxu3 %v1236_v14 }
  0x5a   : > { %805 = vmatpush.bf16.msra.mxu0 %v1324_v15  ;;  %770 = vmatmul.bf16.vlgmr.msrb.gmra.mxu1 %v1805_v54  ;;  %v1538_v54 = vld [vmem:[%s1916_s3 + $0x38] sm:$0xff] }
  0x5b   : > { %818 = vmatpush.bf16.msra.mxu1 %v1388_v16  ;;  %783 = vmatmul.bf16.vlgmr.msrb.gmra.mxu2 %v1807_v58  ;;  %v1537_v58 = vld [vmem:[%s1916_s3 + $0x30] sm:$0xff] }
  0x5c   : > { %796 = vmatmul.bf16.vlgmr.msrb.gmra.mxu3 %v1809_v59  ;;  %986 = vmatpush.bf16.msra.mxu2 %v1538_v54  ;;  %v1536_v59 = vld [vmem:[%s1916_s3 + $0x28] sm:$0xff] }
  0x5d   : > { %999 = vmatpush.bf16.msra.mxu3 %v1546_v46 }
  0x5e   : > { %806 = vmatpush.bf16.msra.mxu0 %v1316_v21 }
  0x5f   : > { %819 = vmatpush.bf16.msra.mxu1 %v1380_v22 }
  0x60   : > { %987 = vmatpush.bf16.msra.mxu2 %v1537_v58 }
  0x61   : > { %1000 = vmatpush.bf16.msra.mxu3 %v1545_v51 }
  0x62   : > { %807 = vmatpush.bf16.msra.mxu0 %v1308_v27 }
  0x63   : > { %820 = vmatpush.bf16.msra.mxu1 %v1372_v28 }
  0x64   : > { %988 = vmatpush.bf16.msra.mxu2 %v1536_v59 }
  0x65   : > { %1001 = vmatpush.bf16.msra.mxu3 %v1544_v57 }
  0x66   : > { %808 = vmatpush.bf16.msra.mxu0 %v1300_v33 }
  0x67   : > { %821 = vmatpush.bf16.msra.mxu1 %v1364_v34 }
  0x69   : > { %809 = vmatmul.bf16.vlgmr.msra.gmra.mxu0 %v1811_v63  ;;  %v1535_v63 = vld [vmem:[%s1916_s3 + $0x20] sm:$0xff]  ;;  %1002 = vmatpush.bf16.msra.mxu3 %v1543_v62 }
  0x6a   : > { %1390 = vmatmul.msk.bf16.vlgmr.msra.gmra.mxu1 %vm694_vm0, %v1817_v45  ;;  %989 = vmatpush.bf16.msra.mxu2 %v1535_v63  ;;  %v1531_v45 = vld [vmem:[%s1916_s3] sm:$0xff] }
  0x6d   : > { %1003 = vmatpush.bf16.msra.mxu3 %v1542_v3 }
  0x6e   : > { %990 = vmatpush.bf16.msra.mxu2 %v1534_v36 }
  0x71   : > { %1004 = vmatpush.bf16.msra.mxu3 %v1541_v6 }
  0x72   : > { %991 = vmatpush.bf16.msra.mxu2 %v1533_v39 }
  0x75   : > { %1005 = vmatpush.bf16.msra.mxu3 %v1540_v10 }
  0x76   : > { %992 = vmatpush.bf16.msra.mxu2 %v1532_v42 }
  0x79   : > { %1006 = vmatpush.bf16.msra.mxu3 %v1539_v13 }
  0x7a   : > { %993 = vmatpush.bf16.msra.mxu2 %v1531_v45 }
  0xb6   : > { %v706_v38 = vpop.f32.mrf.mxu0 }
  0xb7   : > { %v719_v40 = vpop.f32.mrf.mxu1  ;;  %v707_v41 = vadd.f32 %v706_v38, %v316_v37  ;;  %v889_v38 = vld [vmem:[%s1917_s4] sm:$0x1] }
  0xb9   : > { %v720_v43 = vadd.f32 %v719_v40, %v707_v41 }
  0xbe   : > { %v732_v44 = vpop.f32.mrf.mxu2  ;;  %v708_v47 = vpop.f32.mrf.mxu0 }
  0xbf   : > { %v745_v48 = vpop.f32.mrf.mxu3  ;;  %v721_v49 = vpop.f32.mrf.mxu1  ;;  %v733_v50 = vadd.f32 %v732_v44, %v720_v43 }
  0xc1   : > { %v746_v52 = vadd.f32 %v745_v48, %v733_v50 }
  0xc6   : > { %v734_v53 = vpop.f32.mrf.mxu2  ;;  %v758_v56 = vpop.f32.mrf.mxu0 }
  0xc7   : > { %v747_v55 = vpop.f32.mrf.mxu3  ;;  %v759_v60 = vadd.f32 %v758_v56, %v746_v52 }
  0xc9   : > { %v829_v61 = vrot.slane %v759_v60, 1 }
  0xcb   : > { %v833_v0 = vmax.f32 %v759_v60, %v829_v61 }
  0xcd   : > { %v837_v1 = vrot.slane %v833_v0, 2 }
  0xce   : > { %v760_v2 = vpop.f32.mrf.mxu0 }
  0xcf   : > { %v841_v4 = vmax.f32 %v833_v0, %v837_v1 }
  0xd1   : > { %v845_v5 = vmin.f32 %v841_v4, 0.0  ;;  %vm843_vm1 = vcmp.gt.f32.partialorder %v841_v4, 0.0 }
  0xd3   : > { %v847_v7 = vmul.f32 1.442695, %v845_v5 }
  0xd5   : > { %1600 = vpow2.f32 %v847_v7 }
  0xd7   : > { %v771_v8 = vpop.f32.mrf.mxu1 }
  0xd8   : > { %v772_v11 = vadd.f32 %v771_v8, %v317_v9 }
  0xdb   : > { %v1601_v15 = vpop.eup %1600 }
  0xdc   : > { %v1391_v18 = vadd.f32 -1.0, %v1601_v15 }
  0xde   : > { %v784_v12 = vpop.f32.mrf.mxu2  ;;  %v853_v19 = vsel %vm843_vm1, %v841_v4, %v1391_v18 }
  0xdf   : > { %v797_v14 = vpop.f32.mrf.mxu3  ;;  %v785_v16 = vadd.f32 %v784_v12, %v772_v11  ;;  %v773_v17 = vpop.f32.mrf.mxu1  ;;  %v855_v21 = vpack.c.bf16 %v853_v19, %v853_v19 }
  0xe1   : > { %v798_v20 = vadd.f32 %v797_v14, %v785_v16  ;;  %994 = vmatmul.bf16.vlgmr.msra.gmra.mxu2 %v855_v21 }
  0xe6   : > { %v810_v22 = vpop.f32.mrf.mxu0  ;;  %v786_v24 = vpop.f32.mrf.mxu2 }
  0xe7   : > { %v811_v23 = vadd.f32 %v810_v22, %v798_v20  ;;  %v799_v25 = vpop.f32.mrf.mxu3  ;;  %v823_v26 = vpop.f32.mrf.mxu1 }
  0xe9   : > { %v824_v27 = vadd.f32 %v823_v26, %v811_v23 }
  0xeb   : > { %v830_v28 = vrot.slane %v824_v27, 1 }
  0xed   : > { %v834_v29 = vmax.f32 %v824_v27, %v830_v28 }
  0xee   : > { %v812_v30 = vpop.f32.mrf.mxu0 }
  0xef   : > { %v838_v31 = vrot.slane %v834_v29, 2  ;;  %v825_v32 = vpop.f32.mrf.mxu1 }
  0xf1   : > { %v842_v33 = vmax.f32 %v834_v29, %v838_v31 }
  0xf3   : > { %v846_v34 = vmin.f32 %v842_v33, 0.0  ;;  %vm844_vm2 = vcmp.gt.f32.partialorder %v842_v33, 0.0 }
  0xf5   : > { %v849_v54 = vmul.f32 1.442695, %v846_v34 }
  0xf7   : > { %1602 = vpow2.f32 %v849_v54 }
  0xfd   : > { %v1603_v58 = vpop.eup %1602 }
  0xfe   : > { %v1392_v59 = vadd.f32 -1.0, %v1603_v58 }
 0x100   : > { %v854_v63 = vsel %vm844_vm2, %v842_v33, %v1392_v59 }
 0x101   : > { %v856_v35 = vpack.c.bf16 %v854_v63, %v854_v63 }
 0x103   : > { %1007 = vmatmul.bf16.vlgmr.msra.gmra.mxu3 %v856_v35 }
 0x164   : > { %v995_v36 = vpop.f32.mrf.mxu2 }
 0x165   : > { %v996_v39 = vadd.f32 %v995_v36, %v889_v38 }
 0x16c   : > { %v997_v37 = vpop.f32.mrf.mxu2 }
 0x186   : > { %v1008_v40 = vpop.f32.mrf.mxu3 }
 0x187   : > { %v1009_v41 = vadd.f32 %v1008_v40, %v996_v39 }
 0x189   : > { %1013 = vst.msk [vmem:[%s233_s9] sm:$0x1] %vm1012_vm3, %v1009_v41 }
 0x18a   : > { %1661 = shalt.err (!%p1658_p8)
}
 0x18b   : > { %1552 = dma.vmem_to_hbm [thread:$0]  (%p1773_p5), %s1026_s10, 16, %s1028_s11, %s1015_s12  }
 0x18e   : > { %v1010_v42 = vpop.f32.mrf.mxu3 }
 0x18f PF: > { %p1564_p9 = scmp.ge.s32.totalorder %s1700_s21, 2  ;;  %s1039_s25 = sand.u32 1, %s1688_s18  }
 0x190   : > { %s1040_s26 = scalar_lea.sflag [#allocation4], %s1039_s25 }
 0x191   : > { %p1559_p10 = pnand %p1564_p9, %p1777_p6 }
 0x193   : > { %p1560_p11 = pneg %p1559_p10 }
 0x195   : > { %1683 = dma.done.wait (%p1560_p11), %s1040_s26, 16  }
 0x196   : > { %1685 = vsyncadd (%p1560_p11), %s1040_s26, 4294967280  ;;  %p16_p12 = scmp.ge.s32.totalorder %s1760_s24, 4   ;;  %s1921_s18 = smov %s1692_s19 }
 0x197   : > { %s1922_s19 = smov %s1696_s20  ;;  %s1923_s20 = smov %s1771_s27 }
 0x198   : > { %s1924_s21 = smov %s1760_s24  ;;  %18 = sbr.rel (!%p16_p12) target bundleno = 4 (0x4), region = 81 }
 0x19d   :  { %1045 = vsyncpa [#allocation3], 1 }
 0x19e   :  { %1047 = vsyncpa [#allocation3 + $0x1], 1 }
 0x19f   :  { %1048 = vsyncpa [#allocation4], 1 }
 0x1a0   :  { %1050 = vsyncpa [#allocation4 + $0x1], 1 }

</bundles_post_ra>
